<compile_context>
chip_gen: v7x
topology: tpu7x:2x2x1
jax: 0.10.0
libtpu: 0.0.40
codegen_flags: <defaults>
</compile_context>

<pallas_src>
import functools

import jax
import jax.numpy as jnp
from jax.experimental import pallas as pl
from jax.experimental.pallas import tpu as pltpu

LANES = 128
SUBLANES = 8


def _focal_elems(x, t, gamma, hard_targets):
    """Per-element focal loss (f32 in / f32 out).

    hard_targets=True assumes t in {0, 1}: a single shared softplus feeds both
    the BCE term and log_sigmoid term (3 transcendentals/element instead of 5).
    """
    if hard_targets:
        z = x * (2.0 * t - 1.0)
        ez = jnp.exp(-jnp.abs(z))                      # EUP #1
        sp = jnp.maximum(z, 0.0) + jnp.log(1.0 + ez)   # EUP #2  (softplus(z))
        loss = sp - z          # == x - x*t + softplus(-x)   for t in {0, 1}
        g = float(gamma)
        if g == int(g) and 0.0 <= g <= 8.0:
            gi = int(g)
            if gi == 0:
                return loss
            # modulator = exp(gamma*logsigmoid(-z)) = sigmoid(-z)**gamma;
            # sigmoid(-z) reuses ez -> one reciprocal instead of another exp.
            sig = jnp.where(z > 0.0, ez, 1.0) / (1.0 + ez)   # EUP #3
            mod = sig
            for _ in range(gi - 1):
                mod = mod * sig                              # VPU only
        else:
            mod = jnp.exp(-g * sp)                           # EUP #3
        return mod * loss

    # Generic soft-label path (5 transcendentals / element).
    def softplus(a):
        return jnp.maximum(a, 0.0) + jnp.log(1.0 + jnp.exp(-jnp.abs(a)))

    loss = x - x * t + softplus(-x)
    invprobs = -softplus(x * (2.0 * t - 1.0))
    return jnp.exp(invprobs * gamma) * loss


def _focal_sum_kernel(x_ref, t_ref, o_ref, acc_ref, *, gamma, hard_targets,
                      tiles_per_core, n_real_tiles, has_overflow_tile):
    c = pl.program_id(0)
    i = pl.program_id(1)

    @pl.when(i == 0)
    def _():
        acc_ref[...] = jnp.zeros_like(acc_ref)

    def accumulate():
        x = x_ref[...].astype(jnp.float32)
        t = t_ref[...].astype(jnp.float32)
        fl = _focal_elems(x, t, gamma, hard_targets)
        # Per-lane partial sums: pure VPU vreg adds into a single (8,128) acc.
        acc_ref[...] += fl.reshape(-1, SUBLANES, LANES).sum(axis=0)

    if has_overflow_tile:
        # Only the last core's last tile can be a clamped duplicate; skip it.
        ti = c * tiles_per_core + i
        pl.when(ti < n_real_tiles)(accumulate)
    else:
        accumulate()

    @pl.when(i == pl.num_programs(1) - 1)
    def _():
        # Single cross-lane (XLU) reduction per core.
        o_ref[...] = jnp.sum(acc_ref[...]).reshape(1, 1)


def _tpu_plan():
    """(device_kind, n_tensorcores_per_device, max_tile_rows)."""
    try:
        kind = jax.devices()[0].device_kind.lower()
    except Exception:
        kind = ""
    if "v7" in kind:                    # 2 TCs / device, 64 MiB VMEM
        return kind, 2, 8192            # 2 in x 2 buf x 4 MiB = 16 MiB
    if "v4" in kind or "v5p" in kind:   # megacore (2 TCs), 16 MiB scoped dflt
        return kind, 2, 4096
    if "v6" in kind:                    # 1 TC, 32 MiB scoped default
        return kind, 1, 8192
    return kind, 1, 4096                # v5e / unknown: conservative


def focal_loss_pallas(inputs, targets, gamma, hard_targets=True):
    if inputs.shape != targets.shape:
        raise ValueError(
            "Target size ({}) must be the same as input size ({})".format(
                targets.shape, inputs.shape))
    n = int(inputs.size)
    if n == 0:
        return jnp.array(jnp.nan, dtype=jnp.float32)   # torch mean of empty

    x = inputs.reshape(-1)   # free reshape; keep original dtype (cast in-kernel)
    t = targets.reshape(-1)

    kind, n_cores, max_tile_rows = _tpu_plan()

    rows_valid = n // LANES                       # fully-valid (r, 128) rows
    if rows_valid >= SUBLANES:
        # Split valid rows as evenly as possible into <= max_tile_rows tiles
        # (multiples of 8 rows); tile count a multiple of n_cores when possible.
        want_tiles = n_cores * max(1, -(-rows_valid // (max_tile_rows * n_cores)))
        tile_rows = max(SUBLANES, (rows_valid // want_tiles) // SUBLANES * SUBLANES)
        tile_rows = min(tile_rows, max_tile_rows)
        n_real_tiles = rows_valid // tile_rows
    else:
        tile_rows = 0
        n_real_tiles = 0

    total = jnp.float32(0.0)

    if n_real_tiles > 0:
        if n_real_tiles < n_cores:
            n_cores = 1                            # never a fully-wasted core
        tiles_per_core = -(-n_real_tiles // n_cores)
        has_overflow_tile = (n_cores * tiles_per_core) != n_real_tiles

        if n % LANES == 0:
            # Zero-copy lane-dense 2-D view of the flat data.
            rows_2d = n // LANES
            x2 = x.reshape(rows_2d, LANES)
            t2 = t.reshape(rows_2d, LANES)
        else:
            # TODO(synk): a manual-DMA (memory_space=pl.ANY) path could avoid
            # this copy; the lane-ragged case still pads to the next multiple
            # of 128 (the padded row is never covered by the grid below).
            pad = LANES - (n % LANES)
            rows_2d = (n + pad) // LANES
            x2 = jnp.pad(x, (0, pad)).reshape(rows_2d, LANES)
            t2 = jnp.pad(t, (0, pad)).reshape(rows_2d, LANES)

        def in_map(c, i):
            ti = c * tiles_per_core + i
            return (jnp.minimum(ti, n_real_tiles - 1), 0)   # clamp duplicates

        if n_cores == 2 and "v7" in kind:
            dim_sem = (pltpu.CORE_PARALLEL, pltpu.ARBITRARY)
        elif n_cores == 2:
            dim_sem = ("parallel", "arbitrary")
        else:
            dim_sem = ("arbitrary", "arbitrary")

        kernel = functools.partial(
            _focal_sum_kernel, gamma=float(gamma), hard_targets=hard_targets,
            tiles_per_core=tiles_per_core, n_real_tiles=n_real_tiles,
            has_overflow_tile=has_overflow_tile)

        partials = pl.pallas_call(
            kernel,
            out_shape=jax.ShapeDtypeStruct((n_cores, 1), jnp.float32),
            grid_spec=pltpu.PrefetchScalarGridSpec(
                num_scalar_prefetch=0,
                grid=(n_cores, tiles_per_core),
                in_specs=[
                    pl.BlockSpec((tile_rows, LANES), in_map),
                    pl.BlockSpec((tile_rows, LANES), in_map),
                ],
                out_specs=pl.BlockSpec((1, 1), lambda c, i: (c, 0)),
                scratch_shapes=[pltpu.VMEM((SUBLANES, LANES), jnp.float32)],
            ),
            compiler_params=pltpu.CompilerParams(dimension_semantics=dim_sem),
        )(x2, t2)
        total = total + jnp.sum(partials)

    # Ragged tail (< one tile + one partial lane-row): tiny jnp reduction in
    # the wrapper instead of padding/copying the whole tensor.
    n_main = n_real_tiles * tile_rows * LANES
    if n_main < n:
        xt = x[n_main:].astype(jnp.float32)
        tt = t[n_main:].astype(jnp.float32)
        total = total + jnp.sum(_focal_elems(xt, tt, float(gamma), hard_targets))

    return total / jnp.float32(n)


def focal_loss_reference(inputs, targets, gamma):
    x = inputs.astype(jnp.float32)
    t = targets.astype(jnp.float32)
    max_val = jnp.maximum(-x, 0.0)
    loss = x - x * t + max_val + jnp.log(jnp.exp(-max_val) + jnp.exp(-x - max_val))
    invprobs = jax.nn.log_sigmoid(-x * (t * 2.0 - 1.0))
    return jnp.mean(jnp.exp(invprobs * gamma) * loss)


if __name__ == "__main__":
    key = jax.random.PRNGKey(0)
    k1, k2, k3, k4 = jax.random.split(key, 4)
    gamma = 2.0

    # Main check: segmentation-style logits (NCHW) + hard binary targets.
    B, C, H, W = 2, 4, 16, 16
    logits = jax.random.normal(k1, (B, C, H, W), dtype=jnp.float32) * 3.0
    targets = (jax.random.uniform(k2, (B, C, H, W)) > 0.5).astype(jnp.float32)
    loss = jax.block_until_ready(focal_loss_pallas(logits, targets, gamma))
    ref = focal_loss_reference(logits, targets, gamma)
    assert jnp.allclose(loss, ref, rtol=1e-5, atol=1e-5), (loss, ref)

    # Second check exercises the wrapper-side ragged-row tail (30 rows -> one
    # 24-row tile in-kernel + 6 rows summed in the wrapper).
    logits2 = jax.random.normal(k3, (3, 5, 16, 16), dtype=jnp.float32) * 3.0
    targets2 = (jax.random.uniform(k4, (3, 5, 16, 16)) > 0.5).astype(jnp.float32)
    loss2 = jax.block_until_ready(focal_loss_pallas(logits2, targets2, gamma))
    ref2 = focal_loss_reference(logits2, targets2, gamma)
    assert jnp.allclose(loss2, ref2, rtol=1e-5, atol=1e-5), (loss2, ref2)

    print("KERNEL_OK")
</pallas_src>

<mosaic_0001>
module attributes {stable_mosaic.version = 11 : i64} {
  func.func @_focal_sum_kernel(%arg0: i32, %arg1: i32, %arg2: memref<16x128xf32, #tpu.memory_space<vmem>>, %arg3: memref<16x128xf32, #tpu.memory_space<vmem>>, %arg4: memref<1x1xf32, #tpu.memory_space<vmem>>, %arg5: memref<8x128xf32, #tpu.memory_space<vmem>>) attributes {dimension_semantics = [#tpu.dimension_semantics<arbitrary>, #tpu.dimension_semantics<arbitrary>], iteration_bounds = array<i64: 1, 1>, scalar_prefetch = 0 : i64, scratch_operands = 1 : i64, tpu.core_type = #tpu.core_type<tc>, window_params = [{transform_indices = @transform_0, window_bounds = array<i64: 16, 128>}, {transform_indices = @transform_1, window_bounds = array<i64: 16, 128>}, {transform_indices = @transform_2, window_bounds = array<i64: 1, 1>}]} {
    %c0_i32 = arith.constant 0 : i32
    %0 = arith.cmpi eq, %arg1, %c0_i32 : i32
    %1 = arith.extui %0 : i1 to i32
    %c0_i32_0 = arith.constant 0 : i32
    %2 = arith.cmpi ne, %1, %c0_i32_0 : i32
    scf.if %2 {
      %cst_18 = arith.constant 0.000000e+00 : f32
      %38 = vector.broadcast %cst_18 : f32 to vector<8x128xf32>
      %c0_19 = arith.constant 0 : index
      %c0_20 = arith.constant 0 : index
      %39 = vector.load %arg5[%c0_19, %c0_20] : memref<8x128xf32, #tpu.memory_space<vmem>>, vector<8x128xf32>
      tpu.vector_store %arg5[%c0_19, %c0_20], %38 {strides = array<i32>} : memref<8x128xf32, #tpu.memory_space<vmem>>, vector<8x128xf32>,
    } else {
    }
    %c0 = arith.constant 0 : index
    %c0_1 = arith.constant 0 : index
    %3 = vector.load %arg2[%c0, %c0_1] : memref<16x128xf32, #tpu.memory_space<vmem>>, vector<16x128xf32>
    %c0_2 = arith.constant 0 : index
    %c0_3 = arith.constant 0 : index
    %4 = vector.load %arg3[%c0_2, %c0_3] : memref<16x128xf32, #tpu.memory_space<vmem>>, vector<16x128xf32>
    %cst = arith.constant 2.000000e+00 : f32
    %5 = vector.broadcast %cst : f32 to vector<16x128xf32>
    %6 = arith.mulf %5, %4 : vector<16x128xf32>
    %cst_4 = arith.constant 1.000000e+00 : f32
    %7 = vector.broadcast %cst_4 : f32 to vector<16x128xf32>
    %8 = arith.subf %6, %7 : vector<16x128xf32>
    %9 = arith.mulf %3, %8 : vector<16x128xf32>
    %10 = math.absf %9 : vector<16x128xf32>
    %cst_5 = arith.constant 0.000000e+00 : f32
    %11 = vector.broadcast %cst_5 : f32 to vector<16x128xf32>
    %12 = arith.subf %11, %10 : vector<16x128xf32>
    %13 = math.exp %12 : vector<16x128xf32>
    %cst_6 = arith.constant 0.000000e+00 : f32
    %14 = vector.broadcast %cst_6 : f32 to vector<16x128xf32>
    %15 = arith.maximumf %9, %14 : vector<16x128xf32>
    %cst_7 = arith.constant 1.000000e+00 : f32
    %16 = vector.broadcast %cst_7 : f32 to vector<16x128xf32>
    %17 = arith.addf %16, %13 : vector<16x128xf32>
    %18 = math.log %17 : vector<16x128xf32>
    %19 = arith.addf %15, %18 : vector<16x128xf32>
    %20 = arith.subf %19, %9 : vector<16x128xf32>
    %cst_8 = arith.constant 0.000000e+00 : f32
    %21 = vector.broadcast %cst_8 : f32 to vector<16x128xf32>
    %22 = arith.cmpf ogt, %9, %21 : vector<16x128xf32>
    %cst_9 = arith.constant 1.000000e+00 : f32
    %23 = vector.broadcast %cst_9 : f32 to vector<16x128xf32>
    %24 = arith.select %22, %13, %23 : vector<16x128xi1>, vector<16x128xf32>
    %cst_10 = arith.constant 1.000000e+00 : f32
    %25 = vector.broadcast %cst_10 : f32 to vector<16x128xf32>
    %26 = arith.addf %25, %13 : vector<16x128xf32>
    %27 = arith.divf %24, %26 : vector<16x128xf32>
    %28 = arith.mulf %27, %27 : vector<16x128xf32>
    %29 = arith.mulf %28, %20 : vector<16x128xf32>
    %c0_11 = arith.constant 0 : index
    %c0_12 = arith.constant 0 : index
    %30 = vector.load %arg5[%c0_11, %c0_12] : memref<8x128xf32, #tpu.memory_space<vmem>>, vector<8x128xf32>
    %31 = vector.shape_cast %29 : vector<16x128xf32> to vector<2x8x128xf32>
    %cst_13 = arith.constant dense<0.000000e+00> : vector<8x128xf32>
    %32 = vector.multi_reduction <add>, %31, %cst_13 [0] : vector<2x8x128xf32> to vector<8x128xf32>
    %33 = arith.addf %30, %32 : vector<8x128xf32>
    %c0_14 = arith.constant 0 : index
    %c0_15 = arith.constant 0 : index
    %34 = vector.load %arg5[%c0_14, %c0_15] : memref<8x128xf32, #tpu.memory_space<vmem>>, vector<8x128xf32>
    tpu.vector_store %arg5[%c0_14, %c0_15], %33 {strides = array<i32>} : memref<8x128xf32, #tpu.memory_space<vmem>>, vector<8x128xf32>,
    %c0_i32_16 = arith.constant 0 : i32
    %35 = arith.cmpi eq, %arg1, %c0_i32_16 : i32
    %36 = arith.extui %35 : i1 to i32
    %c0_i32_17 = arith.constant 0 : i32
    %37 = arith.cmpi ne, %36, %c0_i32_17 : i32
    scf.if %37 {
      %c0_18 = arith.constant 0 : index
      %c0_19 = arith.constant 0 : index
      %38 = vector.load %arg5[%c0_18, %c0_19] : memref<8x128xf32, #tpu.memory_space<vmem>>, vector<8x128xf32>
      %39 = vector.shape_cast %38 : vector<8x128xf32> to vector<1x8x128xf32>
      %cst_20 = arith.constant dense<0.000000e+00> : vector<1xf32>
      %40 = vector.multi_reduction <add>, %39, %cst_20 [1, 2] : vector<1x8x128xf32> to vector<1xf32>
      %41 = vector.shape_cast %40 : vector<1xf32> to vector<1x1x1xf32>
      %42 = vector.extract %41[0, 0, 0] : f32 from vector<1x1x1xf32>
      %43 = vector.broadcast %42 : f32 to vector<1x1xf32>
      %c0_21 = arith.constant 0 : index
      %c0_22 = arith.constant 0 : index
      %44 = vector.load %arg4[%c0_21, %c0_22] : memref<1x1xf32, #tpu.memory_space<vmem>>, vector<1x1xf32>
      tpu.vector_store %arg4[%c0_21, %c0_22], %43 {strides = array<i32>} : memref<1x1xf32, #tpu.memory_space<vmem>>, vector<1x1xf32>,
    } else {
    }
    return
  }
  func.func @transform_0(%arg0: i32, %arg1: i32) -> (i32, i32) {
    %c1_i32 = arith.constant 1 : i32
    %0 = arith.muli %arg0, %c1_i32 : i32
    %1 = arith.addi %0, %arg1 : i32
    %c0_i32 = arith.constant 0 : i32
    %2 = arith.minsi %1, %c0_i32 : i32
    %c0_i32_0 = arith.constant 0 : i32
    %c0_i32_1 = arith.constant 0 : i32
    return %2, %c0_i32_0 : i32, i32
  }
  func.func @transform_1(%arg0: i32, %arg1: i32) -> (i32, i32) {
    %c1_i32 = arith.constant 1 : i32
    %0 = arith.muli %arg0, %c1_i32 : i32
    %1 = arith.addi %0, %arg1 : i32
    %c0_i32 = arith.constant 0 : i32
    %2 = arith.minsi %1, %c0_i32 : i32
    %c0_i32_0 = arith.constant 0 : i32
    %c0_i32_1 = arith.constant 0 : i32
    return %2, %c0_i32_0 : i32, i32
  }
  func.func @transform_2(%arg0: i32, %arg1: i32) -> (i32, i32) {
    %c0_i32 = arith.constant 0 : i32
    %c0_i32_0 = arith.constant 0 : i32
    return %arg0, %c0_i32 : i32, i32
  }
}

</mosaic_0001>

<bundles_post_ra>
// kernel: tpu_custom_call.1
= control target key start
LH: loop header
LB: loop body
LE: loop exit
PB: predicated region body
PF: predicated region fallthrough
CT: control target
= control target key end

     0   :  { %7 = vsyncpa [#allocation4], 0  ;;  %s296_s0 = inlined_call_operand.hbm [shape: f32[16,128], index: 0, kind: input, shape index: {}]   ;;  %s297_s1 = inlined_call_operand.hbm [shape: f32[16,128], index: 1, kind: input, shape index: {}]   ;;  %s298_s2 = inlined_call_operand.hbm [shape: f32[1,1], index: 2, kind: output, shape index: {}]  }
   0x1   :  { %8 = vsyncpa [#allocation7], 0 }
   0x2   :  { %9 = vsyncpa [#allocation5], 0  ;;  %s240_s9 = smov [#allocation3]   ;;  %s168_s13 = scalar_lea.hbm %s296_s0, 256 }
   0x3   :  { %s21_s10 = sshll.u32 %s240_s9, 4  ;;  %p169_p0 = scmp.ne.s32.totalorder %s296_s0, %s168_s13  ;;  %s22_s10 = int_to_ptr.vmem [resolvable:$true] %s21_s10 }
   0x4   :  { %p172_p1 = scmp.lt.u32.totalorder %s168_s13, %s296_s0 }
   0x6   :  { %p174_p2 = pnand %p172_p1, %p169_p0 }
   0x8   :  { %177 = shalt.err (!%p174_p2)
}
   0x9   :  { %s178_s18 = scalar_lea.vmem %s22_s10, 256  ;;  %p183_p4 = scmp.lt.s32.totalorder %s22_s10, %s22_s10 }
   0xa   :  { %p179_p3 = scmp.ne.s32.totalorder %s22_s10, %s178_s18  ;;  %p184_p5 = scmp.lt.s32.totalorder %s178_s18, %s178_s18 }
   0xc   :  { %p185_p6 = por %p184_p5, %p183_p4 }
   0xe   :  { %p186_p7 = pnand %p185_p6, %p179_p3 }
  0x10   :  { %189 = shalt.err (!%p186_p7)
}
  0x11   :  { %s241_s19 = smov 128   ;;  %s242_s20 = smov 8  }
  0x12   :  { %27 = dma.hbm_to_vmem [thread:$0]  %s296_s0, 256, %s22_s10, [#allocation4], %s241_s19, %s241_s19, %s242_s20  }
  0x13   :  { %s243_s23 = smov [#allocation6]   ;;  %s190_s27 = scalar_lea.hbm %s297_s1, 256 }
  0x14   :  { %s39_s24 = sshll.u32 %s243_s23, 4  ;;  %p191_p8 = scmp.ne.s32.totalorder %s297_s1, %s190_s27  ;;  %s40_s24 = int_to_ptr.vmem [resolvable:$true] %s39_s24 }
  0x15   :  { %p194_p9 = scmp.lt.u32.totalorder %s190_s27, %s297_s1 }
  0x17   :  { %p196_p10 = pnand %p194_p9, %p191_p8 }
  0x19   :  { %199 = shalt.err (!%p196_p10)
}
  0x1a   :  { %s200_s4 = scalar_lea.vmem %s40_s24, 256  ;;  %p205_p12 = scmp.lt.s32.totalorder %s40_s24, %s40_s24 }
  0x1b   :  { %p201_p11 = scmp.ne.s32.totalorder %s40_s24, %s200_s4  ;;  %p206_p13 = scmp.lt.s32.totalorder %s200_s4, %s200_s4 }
  0x1d   :  { %p207_p0 = por %p206_p13, %p205_p12 }
  0x1f   :  { %p208_p1 = pnand %p207_p0, %p201_p11 }
  0x21   :  { %211 = shalt.err (!%p208_p1)
}
  0x22   :  { %45 = dma.hbm_to_vmem [thread:$0]  %s297_s1, 256, %s40_s24, [#allocation7], %s241_s19, %s241_s19, %s242_s20  }
  0x23   :  { %234 = dma.done.wait [#allocation4], 256  }
  0x24   :  { %235 = vsyncadd [#allocation4], 4294967040 }
  0x25   :  { %236 = dma.done.wait [#allocation7], 256  }
  0x26   :  { %237 = vsyncadd [#allocation7], 4294967040  ;;  %v67_v0 = vld [vmem:[#allocation6] sm:$0xff]  ;;  %v68_v1 = vld [vmem:[#allocation6 + $0x8] sm:$0xff]  ;;  %s244_s1 = smov [#allocation8]   ;;  %vm125_vm2 = vcmask 0  }
  0x27   :  { %v69_v2 = vmul.f32 2.0, %v67_v0  ;;  %v65_v3 = vld [vmem:[#allocation3] sm:$0xff]  ;;  %v70_v4 = vmul.f32 2.0, %v68_v1  ;;  %v66_v5 = vld [vmem:[#allocation3 + $0x8] sm:$0xff]  ;;  %s133_s6 = sshll.u32 %s244_s1, 4  ;;  %s134_s6 = int_to_ptr.vmem [resolvable:$true] %s133_s6 }
  0x28   :  { %s212_s8 = scalar_lea.vmem %s134_s6, 16  ;;  %s216_s9 = scalar_lea.vmem %s134_s6, 32 }
  0x29   :  { %v147_v6 = vadd.f32 -1.0, %v69_v2  ;;  %v148_v7 = vadd.f32 -1.0, %v70_v4  ;;  %p213_p2 = scmp.ne.s32.totalorder %s134_s6, %s212_s8  ;;  %p217_p3 = scmp.lt.s32.totalorder %s134_s6, %s134_s6 }
  0x2a   :  { %p218_p4 = scmp.lt.s32.totalorder %s216_s9, %s212_s8 }
  0x2b   :  { %v73_v8 = vmul.f32 %v147_v6, %v65_v3  ;;  %v74_v9 = vmul.f32 %v148_v7, %v66_v5 }
  0x2c   :  { %p219_p5 = por %p218_p4, %p217_p3 }
  0x2d   :  { %v75_v10 = vand.u32 2147483647, %v73_v8  ;;  %v76_v11 = vand.u32 2147483647, %v74_v9  ;;  %vm95_vm0 = vcmp.gt.f32.partialorder %v73_v8, 0.0  ;;  %vm96_vm1 = vcmp.gt.f32.partialorder %v74_v9, 0.0 }
  0x2e   :  { %v83_v20 = vmax.f32 %v73_v8, 0.0  ;;  %v84_v22 = vmax.f32 %v74_v9, 0.0  ;;  %p220_p6 = pnand %p219_p5, %p213_p2 }
  0x2f   :  { %v77_v12 = vsub.f32 0.0, %v75_v10  ;;  %v78_v13 = vsub.f32 0.0, %v76_v11 }
  0x31   :  { %v79_v14 = vmul.f32 1.442695, %v77_v12  ;;  %v81_v15 = vmul.f32 1.442695, %v78_v13 }
  0x33   :  { %156 = vpow2.f32 %v79_v14 }
  0x34   :  { %158 = vpow2.f32 %v81_v15 }
  0x3d   :  { %v157_v16 = vpop.eup %156 }
  0x3e   :  { %v159_v17 = vpop.eup %158  ;;  %v85_v18 = vadd.f32 1.0, %v157_v16  ;;  %v97_v23 = vsel %vm95_vm0, %v157_v16, 1.0 }
  0x3f   :  { %v86_v19 = vadd.f32 1.0, %v159_v17  ;;  %v98_v26 = vsel %vm96_vm1, %v159_v17, 1.0 }
  0x40   :  { %160 = vlog2.f32 %v85_v18 }
  0x41   :  { %162 = vlog2.f32 %v86_v19 }
  0x42   :  { %164 = vrcp.f32 %v85_v18 }
  0x43   :  { %166 = vrcp.f32 %v86_v19 }
  0x4a   :  { %v161_v21 = vpop.eup %160 }
  0x4b   :  { %v163_v24 = vpop.eup %162  ;;  %v88_v25 = vmul.f32 0.6931472, %v161_v21 }
  0x4c   :  { %v165_v27 = vpop.eup %164  ;;  %v90_v28 = vmul.f32 0.6931472, %v163_v24 }
  0x4d   :  { %v167_v29 = vpop.eup %166  ;;  %v91_v30 = vadd.f32 %v88_v25, %v83_v20  ;;  %v100_v31 = vmul.f32 %v165_v27, %v97_v23 }
  0x4e   :  { %v92_v32 = vadd.f32 %v90_v28, %v84_v22  ;;  %v102_v33 = vmul.f32 %v167_v29, %v98_v26 }
  0x4f   :  { %v93_v34 = vsub.f32 %v91_v30, %v73_v8  ;;  %v103_v35 = vmul.f32 %v100_v31, %v100_v31 }
  0x50   :  { %v94_v36 = vsub.f32 %v92_v32, %v74_v9  ;;  %v104_v37 = vmul.f32 %v102_v33, %v102_v33 }
  0x51   :  { %v105_v38 = vmul.f32 %v103_v35, %v93_v34 }
  0x52   :  { %v106_v39 = vmul.f32 %v104_v37, %v94_v36 }
  0x54   :  { %v108_v40 = vadd.f32 %v106_v39, %v105_v38 }
  0x56   :  { %115 = vadd.xlane.f32.xlu0 %v108_v40 }
  0xe3   :  { %v116_v41 = vpop.xlane.xlu0 %115 }
  0xe4   :  { %v117_v42 = vrot.slane %v116_v41, 4 }
  0xe6   :  { %v118_v43 = vadd.f32 %v117_v42, %v116_v41 }
  0xe8   :  { %v119_v44 = vrot.slane %v118_v43, 2 }
  0xea   :  { %v120_v45 = vadd.f32 %v119_v44, %v118_v43 }
  0xec   :  { %v121_v46 = vrot.slane %v120_v45, 1 }
  0xee   :  { %v122_v47 = vadd.f32 %v121_v46, %v120_v45 }
  0xf0   :  { %149 = vpush %v122_v47 }
 0x121   :  { %s150_s7 = spop %149 }
 0x122   :  { %v124_v48 = vstv %s150_s7 }
 0x123   :  { %126 = vst.msk [vmem:[#allocation8] sm:$0x1] %vm125_vm2, %v124_v48 }
 0x124   :  { %223 = shalt.err (!%p220_p6)
}
 0x125   :  { %s224_s12 = scalar_lea.hbm %s298_s2, 16 }
 0x126   :  { %p225_p7 = scmp.ne.s32.totalorder %s298_s2, %s224_s12  ;;  %p228_p8 = scmp.lt.u32.totalorder %s224_s12, %s298_s2 }
 0x128   :  { %p230_p9 = pnand %p228_p8, %p225_p7 }
 0x12a   :  { %233 = shalt.err (!%p230_p9)
}
 0x12b   :  { %136 = dma.vmem_to_hbm [thread:$0]  %s134_s6, 16, %s298_s2, [#allocation5]  }
 0x12c   :  { %238 = dma.done.wait [#allocation5], 16  }
 0x12d   :  { %239 = vsyncadd [#allocation5], 4294967280 }
 0x12e   :  { %140 = vsyncpa [#allocation4], 1 }
 0x12f   :  { %141 = vsyncpa [#allocation7], 1 }
 0x130   :  { %142 = vsyncpa [#allocation5], 1 }

</bundles_post_ra>
